<compile_context>
chip_gen: v7x
topology: tpu7x:2x2x1
jax: 0.10.0
libtpu: 0.0.40
codegen_flags: <defaults>
</compile_context>

<pallas_src>
import jax
import jax.numpy as jnp
from jax.experimental import pallas as pl
from jax.experimental.pallas import tpu as pltpu


# ----------------------------- kernel body ---------------------------------

def _mlp_kernel(x_ref, w1_ref, b1_ref, w2_ref, b2_ref, w3_ref, b3_ref, o_ref):
    cdt = x_ref.dtype                     # MXU operand dtype; accumulation is f32
    x = x_ref[...]

    # Layer 1: Linear + ReLU   (packed/block-diagonal shapes; math is identical)
    h1 = jnp.dot(x, w1_ref[...], preferred_element_type=jnp.float32) + b1_ref[...]
    h1 = jnp.maximum(h1, 0.0)

    # Layer 2: Linear + ReLU
    h2 = jnp.dot(h1.astype(cdt), w2_ref[...],
                 preferred_element_type=jnp.float32) + b2_ref[...]
    h2 = jnp.maximum(h2, 0.0)

    # Layer 3: Linear (no activation)
    out = jnp.dot(h2.astype(cdt), w3_ref[...],
                  preferred_element_type=jnp.float32) + b3_ref[...]
    o_ref[...] = out.astype(o_ref.dtype)


# ----------------------------- helpers --------------------------------------

def _round_up(n, m):
    return ((n + m - 1) // m) * m


def _pick_pack_factor(input_size):
    """Batch-in-lanes factor p so that K = input_size * p matches the MXU width."""
    target_k = 256
    try:
        kind = jax.devices()[0].device_kind.lower()
        if any(v in kind for v in ("v2", "v3", "v4", "v5")):
            target_k = 128           # 128-wide MXU: K=128 in one pass
    except Exception:
        pass
    p = max(1, target_k // max(input_size, 1))
    return min(p, 32)


def _block_diag(w, p):
    """[in, out] -> [in*p, out*p] block-diagonal with p copies of w."""
    in_f, out_f = w.shape
    eye = jnp.eye(p, dtype=w.dtype)
    return jnp.einsum("pq,io->piqo", eye, w).reshape(in_f * p, out_f * p)


# ----------------------------- wrapper ---------------------------------------

def fully_connected_regression(x, params, *, tile_rows=32768):
    """x: [B, input_size]; params: dict(w1,b1,w2,b2,w3,b3) with weights [in, out].

    tile_rows: batch rows (un-packed) per grid step.
    """
    w1, b1, w2, b2, w3, b3 = (params["w1"], params["b1"], params["w2"],
                              params["b2"], params["w3"], params["b3"])
    B, in_size = x.shape
    hidden = w1.shape[1]
    out_size = w3.shape[1]

    # Guard the [in, out] weight layout (torch state dicts must be transposed).
    assert w1.shape == (in_size, hidden), "w1 must be [input_size, hidden]"
    assert w2.shape == (hidden, hidden), "w2 must be [hidden, hidden]"
    assert w3.shape == (hidden, out_size), "w3 must be [hidden, output_size]"
    assert b1.shape == (1, hidden) and b2.shape == (1, hidden) and b3.shape == (1, out_size)

    cdt = x.dtype                              # compute dtype follows the input
    sub = 8 if jnp.dtype(cdt).itemsize >= 4 else (16 if jnp.dtype(cdt).itemsize == 2 else 32)

    # --- batch-in-lanes packing ------------------------------------------------
    p = _pick_pack_factor(in_size)
    b_pad = _round_up(max(B, 1), p)
    if b_pad != B:                             # at most p-1 rows of padding
        x = jnp.pad(x, ((0, b_pad - B), (0, 0)))
    bp = b_pad // p                            # packed batch rows
    x_p = x.reshape(bp, in_size * p)           # free row-major reshape

    # Block-diagonal weights / tiled biases (tiny; built once per call).
    w1_p = _block_diag(w1.astype(cdt), p)      # [F*p, H*p]
    w2_p = _block_diag(w2.astype(cdt), p)      # [H*p, H*p]
    w3_p = _block_diag(w3.astype(cdt), p)      # [H*p, O*p]
    b1_p = jnp.tile(b1.astype(jnp.float32), (1, p))
    b2_p = jnp.tile(b2.astype(jnp.float32), (1, p))
    b3_p = jnp.tile(b3.astype(jnp.float32), (1, p))

    # --- packed-batch tiling (ragged final block handled by Pallas) -------------
    tbp_req = _round_up(max(tile_rows // p, sub), sub)
    if bp <= tbp_req:
        tbp = bp                               # single block == full array dim
        grid = (1,)
    else:
        tbp = tbp_req
        grid = (pl.cdiv(bp, tbp),)

    def resident(arr):                         # DMA'd once, VMEM-resident
        return pl.BlockSpec(arr.shape, lambda i: (0, 0))

    itemsize = jnp.dtype(cdt).itemsize
    cost = pl.CostEstimate(
        flops=2 * b_pad * (in_size * hidden + hidden * hidden + hidden * out_size),
        transcendentals=0,
        bytes_accessed=int(x_p.size * itemsize + b_pad * out_size * itemsize
                           + (w1_p.size + w2_p.size + w3_p.size) * itemsize
                           + (b1_p.size + b2_p.size + b3_p.size) * 4),
    )

    out_p = pl.pallas_call(
        _mlp_kernel,
        out_shape=jax.ShapeDtypeStruct((bp, out_size * p), cdt),
        grid_spec=pltpu.PrefetchScalarGridSpec(
            num_scalar_prefetch=0,
            grid=grid,
            in_specs=[
                pl.BlockSpec((tbp, in_size * p), lambda i: (i, 0)),  # x: tiled on batch
                resident(w1_p), resident(b1_p),
                resident(w2_p), resident(b2_p),
                resident(w3_p), resident(b3_p),
            ],
            out_specs=pl.BlockSpec((tbp, out_size * p), lambda i: (i, 0)),
        ),
        compiler_params=pltpu.CompilerParams(
            dimension_semantics=("parallel",),        # megacore sharding on v7x
            vmem_limit_bytes=40 * 1024 * 1024,        # headroom on v7x's 64 MiB/TC
        ),
        cost_estimate=cost,
    )(x_p, w1_p, b1_p, w2_p, b2_p, w3_p, b3_p)

    out = out_p.reshape(b_pad, out_size)       # free un-pack reshape
    return out[:B] if b_pad != B else out


# ----------------------------- params & reference ---------------------------

def init_params(key, input_size, output_size, hidden_size=10):
    """PyTorch nn.Linear-style init (U[-1/sqrt(fan_in), 1/sqrt(fan_in)]);
    weights stored as [in, out]."""
    keys = jax.random.split(key, 6)

    def linear(kw, kb, fan_in, fan_out):
        bound = 1.0 / jnp.sqrt(jnp.float32(fan_in))
        w = jax.random.uniform(kw, (fan_in, fan_out), jnp.float32, -bound, bound)
        b = jax.random.uniform(kb, (1, fan_out), jnp.float32, -bound, bound)
        return w, b

    w1, b1 = linear(keys[0], keys[1], input_size, hidden_size)
    w2, b2 = linear(keys[2], keys[3], hidden_size, hidden_size)
    w3, b3 = linear(keys[4], keys[5], hidden_size, output_size)
    return {"w1": w1, "b1": b1, "w2": w2, "b2": b2, "w3": w3, "b3": b3}


def _reference(x, p):
    h1 = jnp.maximum(x @ p["w1"] + p["b1"], 0.0)
    h2 = jnp.maximum(h1 @ p["w2"] + p["b2"], 0.0)
    return h2 @ p["w3"] + p["b3"]


# ----------------------------- tests ----------------------------------------

if __name__ == "__main__":
    key = jax.random.PRNGKey(0)
    k_x, k_p, k_x2 = jax.random.split(key, 3)

    input_size, hidden_size, output_size = 32, 10, 4
    params = init_params(k_p, input_size, output_size, hidden_size)

    # 1) Small smoke test (single grid step, packed block == full array).
    x = jax.random.normal(k_x, (64, input_size), jnp.float32)
    out = jax.block_until_ready(fully_connected_regression(x, params))
    ref = _reference(x, params)
    assert out.shape == (64, output_size)
    assert jnp.allclose(out, ref, atol=1e-4, rtol=1e-4), "mismatch (small)"

    # 2) Ragged batch + multi-step grid (exercises packing pad, partial last
    #    block masking, and VMEM-resident weights across grid steps).
    x2 = jax.random.normal(k_x2, (301, input_size), jnp.float32)
    out2 = jax.block_until_ready(
        fully_connected_regression(x2, params, tile_rows=128))
    ref2 = _reference(x2, params)
    assert out2.shape == (301, output_size)
    assert jnp.allclose(out2, ref2, atol=1e-4, rtol=1e-4), "mismatch (tiled/ragged)"

    print("KERNEL_OK")
</pallas_src>

<mosaic_0001>
module attributes {stable_mosaic.version = 11 : i64} {
  func.func @_mlp_kernel(%arg0: i32, %arg1: memref<8x256xf32, #tpu.memory_space<vmem>>, %arg2: memref<256x80xf32, #tpu.memory_space<vmem>>, %arg3: memref<1x80xf32, #tpu.memory_space<vmem>>, %arg4: memref<80x80xf32, #tpu.memory_space<vmem>>, %arg5: memref<1x80xf32, #tpu.memory_space<vmem>>, %arg6: memref<80x32xf32, #tpu.memory_space<vmem>>, %arg7: memref<1x32xf32, #tpu.memory_space<vmem>>, %arg8: memref<8x32xf32, #tpu.memory_space<vmem>>) attributes {dimension_semantics = [#tpu.dimension_semantics<parallel>], iteration_bounds = array<i64: 1>, scalar_prefetch = 0 : i64, scratch_operands = 0 : i64, tpu.core_type = #tpu.core_type<tc>, window_params = [{transform_indices = @transform_0, window_bounds = array<i64: 8, 256>}, {pipeline_mode = #tpu.pipeline_mode<synchronous>, transform_indices = @transform_1, window_bounds = array<i64: 256, 80>}, {pipeline_mode = #tpu.pipeline_mode<synchronous>, transform_indices = @transform_2, window_bounds = array<i64: 1, 80>}, {pipeline_mode = #tpu.pipeline_mode<synchronous>, transform_indices = @transform_3, window_bounds = array<i64: 80, 80>}, {pipeline_mode = #tpu.pipeline_mode<synchronous>, transform_indices = @transform_4, window_bounds = array<i64: 1, 80>}, {pipeline_mode = #tpu.pipeline_mode<synchronous>, transform_indices = @transform_5, window_bounds = array<i64: 80, 32>}, {pipeline_mode = #tpu.pipeline_mode<synchronous>, transform_indices = @transform_6, window_bounds = array<i64: 1, 32>}, {transform_indices = @transform_7, window_bounds = array<i64: 8, 32>}]} {
    %c0 = arith.constant 0 : index
    %c0_0 = arith.constant 0 : index
    %0 = vector.load %arg1[%c0, %c0_0] : memref<8x256xf32, #tpu.memory_space<vmem>>, vector<8x256xf32>
    %c0_1 = arith.constant 0 : index
    %c0_2 = arith.constant 0 : index
    %1 = vector.load %arg2[%c0_1, %c0_2] : memref<256x80xf32, #tpu.memory_space<vmem>>, vector<256x80xf32>
    %cst = arith.constant dense<0.000000e+00> : vector<8x80xf32>
    %2 = tpu.matmul %0, %1, %cst {dimension_numbers = #tpu.dot_dimension_numbers<[1], [0], [0], [1], [0, 0, 1, 1], [], []>} : vector<8x256xf32>, vector<256x80xf32>, vector<8x80xf32> -> vector<8x80xf32>
    %c0_3 = arith.constant 0 : index
    %c0_4 = arith.constant 0 : index
    %3 = vector.load %arg3[%c0_3, %c0_4] : memref<1x80xf32, #tpu.memory_space<vmem>>, vector<1x80xf32>
    %4 = vector.broadcast %3 : vector<1x80xf32> to vector<8x80xf32>
    %5 = arith.addf %2, %4 : vector<8x80xf32>
    %cst_5 = arith.constant 0.000000e+00 : f32
    %6 = vector.broadcast %cst_5 : f32 to vector<8x80xf32>
    %7 = arith.maximumf %5, %6 : vector<8x80xf32>
    %c0_6 = arith.constant 0 : index
    %c0_7 = arith.constant 0 : index
    %8 = vector.load %arg4[%c0_6, %c0_7] : memref<80x80xf32, #tpu.memory_space<vmem>>, vector<80x80xf32>
    %cst_8 = arith.constant dense<0.000000e+00> : vector<8x80xf32>
    %9 = tpu.matmul %7, %8, %cst_8 {dimension_numbers = #tpu.dot_dimension_numbers<[1], [0], [0], [1], [0, 0, 1, 1], [], []>} : vector<8x80xf32>, vector<80x80xf32>, vector<8x80xf32> -> vector<8x80xf32>
    %c0_9 = arith.constant 0 : index
    %c0_10 = arith.constant 0 : index
    %10 = vector.load %arg5[%c0_9, %c0_10] : memref<1x80xf32, #tpu.memory_space<vmem>>, vector<1x80xf32>
    %11 = vector.broadcast %10 : vector<1x80xf32> to vector<8x80xf32>
    %12 = arith.addf %9, %11 : vector<8x80xf32>
    %cst_11 = arith.constant 0.000000e+00 : f32
    %13 = vector.broadcast %cst_11 : f32 to vector<8x80xf32>
    %14 = arith.maximumf %12, %13 : vector<8x80xf32>
    %c0_12 = arith.constant 0 : index
    %c0_13 = arith.constant 0 : index
    %15 = vector.load %arg6[%c0_12, %c0_13] : memref<80x32xf32, #tpu.memory_space<vmem>>, vector<80x32xf32>
    %cst_14 = arith.constant dense<0.000000e+00> : vector<8x32xf32>
    %16 = tpu.matmul %14, %15, %cst_14 {dimension_numbers = #tpu.dot_dimension_numbers<[1], [0], [0], [1], [0, 0, 1, 1], [], []>} : vector<8x80xf32>, vector<80x32xf32>, vector<8x32xf32> -> vector<8x32xf32>
    %c0_15 = arith.constant 0 : index
    %c0_16 = arith.constant 0 : index
    %17 = vector.load %arg7[%c0_15, %c0_16] : memref<1x32xf32, #tpu.memory_space<vmem>>, vector<1x32xf32>
    %18 = vector.broadcast %17 : vector<1x32xf32> to vector<8x32xf32>
    %19 = arith.addf %16, %18 : vector<8x32xf32>
    %c0_17 = arith.constant 0 : index
    %c0_18 = arith.constant 0 : index
    %20 = vector.load %arg8[%c0_17, %c0_18] : memref<8x32xf32, #tpu.memory_space<vmem>>, vector<8x32xf32>
    tpu.vector_store %arg8[%c0_17, %c0_18], %19 {strides = array<i32>} : memref<8x32xf32, #tpu.memory_space<vmem>>, vector<8x32xf32>,
    return
  }
  func.func @transform_0(%arg0: i32) -> (i32, i32) {
    %c0_i32 = arith.constant 0 : i32
    %c0_i32_0 = arith.constant 0 : i32
    return %arg0, %c0_i32 : i32, i32
  }
  func.func @transform_1(%arg0: i32) -> (i32, i32) {
    %c0_i32 = arith.constant 0 : i32
    %c0_i32_0 = arith.constant 0 : i32
    %c0_i32_1 = arith.constant 0 : i32
    return %c0_i32, %c0_i32_0 : i32, i32
  }
  func.func @transform_2(%arg0: i32) -> (i32, i32) {
    %c0_i32 = arith.constant 0 : i32
    %c0_i32_0 = arith.constant 0 : i32
    %c0_i32_1 = arith.constant 0 : i32
    return %c0_i32, %c0_i32_0 : i32, i32
  }
  func.func @transform_3(%arg0: i32) -> (i32, i32) {
    %c0_i32 = arith.constant 0 : i32
    %c0_i32_0 = arith.constant 0 : i32
    %c0_i32_1 = arith.constant 0 : i32
    return %c0_i32, %c0_i32_0 : i32, i32
  }
  func.func @transform_4(%arg0: i32) -> (i32, i32) {
    %c0_i32 = arith.constant 0 : i32
    %c0_i32_0 = arith.constant 0 : i32
    %c0_i32_1 = arith.constant 0 : i32
    return %c0_i32, %c0_i32_0 : i32, i32
  }
  func.func @transform_5(%arg0: i32) -> (i32, i32) {
    %c0_i32 = arith.constant 0 : i32
    %c0_i32_0 = arith.constant 0 : i32
    %c0_i32_1 = arith.constant 0 : i32
    return %c0_i32, %c0_i32_0 : i32, i32
  }
  func.func @transform_6(%arg0: i32) -> (i32, i32) {
    %c0_i32 = arith.constant 0 : i32
    %c0_i32_0 = arith.constant 0 : i32
    %c0_i32_1 = arith.constant 0 : i32
    return %c0_i32, %c0_i32_0 : i32, i32
  }
  func.func @transform_7(%arg0: i32) -> (i32, i32) {
    %c0_i32 = arith.constant 0 : i32
    %c0_i32_0 = arith.constant 0 : i32
    return %arg0, %c0_i32 : i32, i32
  }
}

</mosaic_0001>

<bundles_post_ra>
// kernel: tpu_custom_call.1
= control target key start
LH: loop header
LB: loop body
LE: loop exit
PB: predicated region body
PF: predicated region fallthrough
CT: control target
= control target key end

     0   :  { %v535_v7 = vmov 0.0|0.0   ;;  %s776_s0 = inlined_call_operand.vmem [shape: f32[8,256], index: 0, kind: input, shape index: {}]   ;;  %s777_s1 = inlined_call_operand.vmem [shape: f32[256,80], index: 1, kind: input, shape index: {}]   ;;  %s778_s2 = inlined_call_operand.vmem [shape: f32[1,80], index: 2, kind: input, shape index: {}]   ;;  %s779_s3 = inlined_call_operand.vmem [shape: f32[80,80], index: 3, kind: input, shape index: {}]   ;;  %s780_s4 = inlined_call_operand.vmem [shape: f32[1,80], index: 4, kind: input, shape index: {}]   ;;  %s781_s5 = inlined_call_operand.vmem [shape: f32[80,32], index: 5, kind: input, shape index: {}]   ;;  %s782_s6 = inlined_call_operand.vmem [shape: f32[1,32], index: 6, kind: input, shape index: {}]   ;;  %s783_s7 = inlined_call_operand.hbm [shape: f32[8,32], index: 7, kind: output, shape index: {}]  }
   0x1   :  { %v45_v0 = vld [vmem:[%s777_s1 + $0x80] sm:$0xff]  ;;  %v46_v1 = vld [vmem:[%s777_s1 + $0x88] sm:$0xff]  ;;  %v47_v5 = vld [vmem:[%s777_s1 + $0x90] sm:$0xff]  ;;  %477 = vmatprep.subr.bf16.mxu1 %v535_v7 }
   0x2   :  { %v29_v2 = vld [vmem:[%s777_s1] sm:$0xff]  ;;  %v445_v3 = vpack.c.bf16 %v46_v1, %v45_v0  ;;  %v30_v4 = vld [vmem:[%s777_s1 + $0x8] sm:$0xff]  ;;  %v48_v6 = vld [vmem:[%s777_s1 + $0x98] sm:$0xff] }
   0x3   :  { %v447_v8 = vpack.c.bf16 %v30_v4, %v29_v2  ;;  %v449_v9 = vpack.c.bf16 %v48_v6, %v47_v5  ;;  %v31_v10 = vld [vmem:[%s777_s1 + $0x10] sm:$0xff]  ;;  %v32_v11 = vld [vmem:[%s777_s1 + $0x18] sm:$0xff]  ;;  %v49_v12 = vld [vmem:[%s777_s1 + $0xa0] sm:$0xff] }
   0x4   :  { %446 = vmatprep.subr.bf16.mxu0 %v445_v3  ;;  %v50_v13 = vld [vmem:[%s777_s1 + $0xa8] sm:$0xff]  ;;  %v451_v14 = vpack.c.bf16 %v32_v11, %v31_v10  ;;  %v33_v16 = vld [vmem:[%s777_s1 + $0x20] sm:$0xff]  ;;  %v51_v18 = vld [vmem:[%s777_s1 + $0xb0] sm:$0xff] }
   0x5   :  { %448 = vmatpush3.bf16.msra.mxu0 %v447_v8  ;;  %v453_v15 = vpack.c.bf16 %v50_v13, %v49_v12  ;;  %v34_v17 = vld [vmem:[%s777_s1 + $0x28] sm:$0xff]  ;;  %v52_v19 = vld [vmem:[%s777_s1 + $0xb8] sm:$0xff]  ;;  %v35_v22 = vld [vmem:[%s777_s1 + $0x30] sm:$0xff] }
   0x6   :  { %450 = vmatprep.subr.bf16.mxu0 %v449_v9  ;;  %v455_v20 = vpack.c.bf16 %v34_v17, %v33_v16  ;;  %v457_v21 = vpack.c.bf16 %v52_v19, %v51_v18  ;;  %v36_v23 = vld [vmem:[%s777_s1 + $0x38] sm:$0xff]  ;;  %v53_v24 = vld [vmem:[%s777_s1 + $0xc0] sm:$0xff]  ;;  %v54_v25 = vld [vmem:[%s777_s1 + $0xc8] sm:$0xff] }
   0x7   :  { %v28_v26 = vld [vmem:[%s776_s0 + $0x8] sm:$0xff]  ;;  %v139_v27 = vld [vmem:[%s779_s3] sm:$0xff]  ;;  %v459_v29 = vpack.c.bf16 %v36_v23, %v35_v22  ;;  %v141_v31 = vld [vmem:[%s779_s3 + $0x10] sm:$0xff]  ;;  %v461_v33 = vpack.c.bf16 %v54_v25, %v53_v24 }
   0x8   :  { %132 = vmatprep.mubr.f32.mxu0 %v28_v26  ;;  %v140_v28 = vld [vmem:[%s779_s3 + $0x8] sm:$0xff]  ;;  %v142_v32 = vld [vmem:[%s779_s3 + $0x18] sm:$0xff]  ;;  %v37_v34 = vld [vmem:[%s777_s1 + $0x40] sm:$0xff] }
   0x9   :  { %452 = vmatpush3.bf16.msra.mxu0 %v451_v14  ;;  %v478_v30 = vpack.c.bf16 %v140_v28, %v139_v27  ;;  %v38_v35 = vld [vmem:[%s777_s1 + $0x48] sm:$0xff] }
   0xa   :  { %454 = vmatprep.subr.bf16.mxu0 %v453_v15 }
   0xd   :  { %456 = vmatpush3.bf16.msra.mxu0 %v455_v20 }
   0xe   :  { %458 = vmatprep.subr.bf16.mxu0 %v457_v21 }
   0xf   :  { %12 = vsyncpa [#allocation3], 0  ;;  %v55_v36 = vld [vmem:[%s777_s1 + $0xd0] sm:$0xff]  ;;  %v56_v37 = vld [vmem:[%s777_s1 + $0xd8] sm:$0xff]  ;;  %479 = vmatpush3.bf16.msra.mxu1 %v478_v30  ;;  %v481_v38 = vpack.c.bf16 %v142_v32, %v141_v31  ;;  %v463_v41 = vpack.c.bf16 %v38_v35, %v37_v34  ;;  %vm536_vm0 = vmmov 0   ;;  %v537_v2 = vmov 0.0  }
  0x10   :  { %480 = vmatprep.subr.bf16.mxu1 %v535_v7  ;;  %v143_v39 = vld [vmem:[%s779_s3 + $0x20] sm:$0xff]  ;;  %v144_v40 = vld [vmem:[%s779_s3 + $0x28] sm:$0xff]  ;;  %v465_v42 = vpack.c.bf16 %v56_v37, %v55_v36  ;;  %v39_v43 = vld [vmem:[%s777_s1 + $0x50] sm:$0xff]  ;;  %419 = vmatprep.mubr.msk.f32.mxu1 %vm536_vm0, %v537_v2  ;;  %vm156_vm1 = vcmask 654336   ;;  %s538_s18 = smov [#allocation2]   ;;  %vm321_vm2 = vcmask 261120  }
  0x11   :  { %460 = vmatpush3.bf16.msra.mxu0 %v459_v29  ;;  %v40_v44 = vld [vmem:[%s777_s1 + $0x58] sm:$0xff]  ;;  %v57_v45 = vld [vmem:[%s777_s1 + $0xe0] sm:$0xff]  ;;  %v58_v46 = vld [vmem:[%s777_s1 + $0xe8] sm:$0xff]  ;;  %v484_v47 = vpack.c.bf16 %v144_v40, %v143_v39 }
  0x12   :  { %462 = vmatprep.subr.bf16.mxu0 %v461_v33  ;;  %v467_v48 = vpack.c.bf16 %v40_v44, %v39_v43  ;;  %v469_v49 = vpack.c.bf16 %v58_v46, %v57_v45  ;;  %v41_v50 = vld [vmem:[%s777_s1 + $0x60] sm:$0xff]  ;;  %v42_v51 = vld [vmem:[%s777_s1 + $0x68] sm:$0xff]  ;;  %v59_v52 = vld [vmem:[%s777_s1 + $0xf0] sm:$0xff] }
  0x13   :  { %482 = vmatpush3.bf16.msra.mxu1 %v481_v38  ;;  %v60_v53 = vld [vmem:[%s777_s1 + $0xf8] sm:$0xff]  ;;  %v471_v54 = vpack.c.bf16 %v42_v51, %v41_v50  ;;  %v43_v56 = vld [vmem:[%s777_s1 + $0x70] sm:$0xff]  ;;  %v27_v59 = vld [vmem:[%s776_s0] sm:$0xff]  ;;  %s329_s0 = sshll.u32 %s538_s18, 4  ;;  %s330_s0 = int_to_ptr.vmem [resolvable:$true] %s329_s0 }
  0x14   :  { %483 = vmatprep.subr.bf16.mxu1 %v535_v7  ;;  %v473_v55 = vpack.c.bf16 %v60_v53, %v59_v52  ;;  %v44_v57 = vld [vmem:[%s777_s1 + $0x78] sm:$0xff]  ;;  %v145_v60 = vld [vmem:[%s779_s3 + $0x30] sm:$0xff]  ;;  %v147_v63 = vld [vmem:[%s779_s3 + $0x40] sm:$0xff]  ;;  %p516_p1 = scmp.lt.s32.totalorder %s330_s0, %s330_s0 }
  0x15   :  { %464 = vmatpush3.bf16.msra.mxu0 %v463_v41  ;;  %v475_v58 = vpack.c.bf16 %v44_v57, %v43_v56  ;;  %v146_v61 = vld [vmem:[%s779_s3 + $0x38] sm:$0xff]  ;;  %v148_v0 = vld [vmem:[%s779_s3 + $0x48] sm:$0xff]  ;;  %v337_v4 = vld [vmem:[%s778_s2] ss:$0 sm:$0xff] }
  0x16   :  { %466 = vmatprep.subr.bf16.mxu0 %v465_v42  ;;  %v487_v62 = vpack.c.bf16 %v146_v61, %v145_v60  ;;  %v490_v1 = vpack.c.bf16 %v148_v0, %v147_v63  ;;  %v231_v8 = vld [vmem:[%s781_s5] sm:$0xff]  ;;  %v232_v9 = vld [vmem:[%s781_s5 + $0x8] sm:$0xff]  ;;  %v233_v13 = vld [vmem:[%s781_s5 + $0x10] sm:$0xff] }
  0x17   :  { %485 = vmatpush3.bf16.msra.mxu1 %v484_v47  ;;  %v493_v11 = vpack.c.bf16 %v232_v9, %v231_v8  ;;  %v234_v14 = vld [vmem:[%s781_s5 + $0x18] sm:$0xff]  ;;  %v235_v16 = vld [vmem:[%s781_s5 + $0x20] sm:$0xff]  ;;  %v236_v17 = vld [vmem:[%s781_s5 + $0x28] sm:$0xff] }
  0x18   :  { %486 = vmatprep.subr.bf16.mxu1 %v535_v7  ;;  %v496_v15 = vpack.c.bf16 %v234_v14, %v233_v13  ;;  %v499_v18 = vpack.c.bf16 %v236_v17, %v235_v16  ;;  %v237_v19 = vld [vmem:[%s781_s5 + $0x30] sm:$0xff]  ;;  %v238_v20 = vld [vmem:[%s781_s5 + $0x38] sm:$0xff]  ;;  %v239_v22 = vld [vmem:[%s781_s5 + $0x40] sm:$0xff] }
  0x19   :  { %468 = vmatpush3.bf16.msra.mxu0 %v467_v48  ;;  %v502_v21 = vpack.c.bf16 %v238_v20, %v237_v19  ;;  %v240_v23 = vld [vmem:[%s781_s5 + $0x48] sm:$0xff]  ;;  %v338_v25 = vld [vmem:[%s780_s4] ss:$0 sm:$0xff]  ;;  %s511_s5 = scalar_lea.vmem %s330_s0, 128 }
  0x1a   :  { %470 = vmatprep.subr.bf16.mxu0 %v469_v49  ;;  %v505_v24 = vpack.c.bf16 %v240_v23, %v239_v22  ;;  %p512_p0 = scmp.ne.s32.totalorder %s330_s0, %s511_s5  ;;  %p517_p2 = scmp.lt.s32.totalorder %s511_s5, %s511_s5 }
  0x1b   :  { %488 = vmatpush3.bf16.msra.mxu1 %v487_v62 }
  0x1c   :  { %489 = vmatprep.subr.bf16.mxu1 %v535_v7  ;;  %p518_p3 = por %p517_p2, %p516_p1 }
  0x1d   :  { %472 = vmatpush3.bf16.msra.mxu0 %v471_v54 }
  0x1e   :  { %474 = vmatprep.subr.bf16.mxu0 %v473_v55  ;;  %p519_p4 = pnand %p518_p3, %p512_p0 }
  0x1f   :  { %491 = vmatpush3.bf16.msra.mxu1 %v490_v1 }
  0x20   :  { %492 = vmatprep.subr.bf16.mxu1 %v535_v7 }
  0x21   :  { %476 = vmatpush3.bf16.msra.mxu0 %v475_v58 }
  0x24   :  { %133 = vmatmul.mubr.f32.vlgmr.msra.gmra.mrb[0].mxu0 %v27_v59 }
  0xf7   :  { %v374_v3 = vpop.f32.mrb[0].mxu0 }
  0xf8   :  { %v375_v5 = vpop.f32.mrb[1].mxu0 }
  0xf9   :  { %v376_v6 = vadd.f32 %v375_v5, %v374_v3 }
  0xfb   :  { %v135_v10 = vadd.f32 %v376_v6, %v337_v4 }
  0xfd   :  { %v138_v12 = vmax.f32 %v135_v10, 0.0 }
  0xff   :  { %420 = vmatmul.mubr.msk.f32.vlgmr.msra.gmra.mrb[0].mxu1 %vm156_vm1, %v138_v12 }
 0x100   :  { %494 = vmatpush3.bf16.msra.mxu1 %v493_v11  ;;  %442 = vmatprep.mubr.msk.f32.mxu1 %vm536_vm0, %v537_v2 }
 0x101   :  { %495 = vmatprep.subr.bf16.mxu1 %v535_v7 }
 0x104   :  { %497 = vmatpush3.bf16.msra.mxu1 %v496_v15 }
 0x105   :  { %498 = vmatprep.subr.bf16.mxu1 %v535_v7 }
 0x108   :  { %500 = vmatpush3.bf16.msra.mxu1 %v499_v18 }
 0x109   :  { %501 = vmatprep.subr.bf16.mxu1 %v535_v7 }
 0x10c   :  { %503 = vmatpush3.bf16.msra.mxu1 %v502_v21 }
 0x10d   :  { %504 = vmatprep.subr.bf16.mxu1 %v535_v7  ;;  %v340_v7 = vld [vmem:[%s782_s6] ss:$0 sm:$0xff] }
 0x110   :  { %506 = vmatpush3.bf16.msra.mxu1 %v505_v24 }
 0x1d2   :  { %v226_v26 = vpop.f32.mrb[0].mxu1 }
 0x1d3   :  { %v227_v27 = vadd.f32 %v338_v25, %v226_v26  ;;  %v421_v28 = vpop.f32.mrb[1].mxu1 }
 0x1d5   :  { %v230_v29 = vmax.f32 %v227_v27, 0.0 }
 0x1d7   :  { %443 = vmatmul.mubr.msk.f32.vlgmr.msra.gmra.mrb[2].mxu1 %vm156_vm1, %v230_v29 }
 0x2aa   :  { %v317_v30 = vpop.f32.mrb[2].mxu1 }
 0x2ab   :  { %v318_v31 = vadd.f32 %v340_v7, %v317_v30  ;;  %v444_v32 = vpop.f32.mrb[3].mxu1 }
 0x2ad   :  { %322 = vst.msk [vmem:[#allocation2] sm:$0xff] %vm321_vm2, %v318_v31 }
 0x2ae   :  { %522 = shalt.err (!%p519_p4)
}
 0x2af   :  { %s523_s20 = scalar_lea.hbm %s783_s7, 128 }
 0x2b0   :  { %p524_p5 = scmp.ne.s32.totalorder %s783_s7, %s523_s20  ;;  %p527_p6 = scmp.lt.u32.totalorder %s523_s20, %s783_s7 }
 0x2b2   :  { %p529_p7 = pnand %p527_p6, %p524_p5 }
 0x2b4   :  { %532 = shalt.err (!%p529_p7)
}
 0x2b5   :  { %332 = dma.vmem_to_hbm [thread:$0]  %s330_s0, 128, %s783_s7, [#allocation3]  }
 0x2b6   :  { %533 = dma.done.wait [#allocation3], 128  }
 0x2b7   :  { %534 = vsyncadd [#allocation3], 4294967168 }
 0x2b8   :  { %336 = vsyncpa [#allocation3], 1 }

</bundles_post_ra>
